<compile_context>
chip_gen: v6e
topology: v6e:2x2x1
jax: 0.10.0
libtpu: 0.0.40
codegen_flags: <defaults>
</compile_context>

<pallas_src>
import jax
import jax.numpy as jnp
from jax.experimental import pallas as pl
from jax.experimental.pallas import tpu as pltpu

H_BERT = 1024   # BERT hidden size (matches nn.Linear(1024, 8))
H_FC1 = 8       # fc1 output features
H_OUT = 1       # fc2 output features

# Batch-tile rows. 2048 bf16 rows x 1024 = 4 MiB per block, 8 MiB double-buffered:
# fits the default scoped-VMEM budget on v5e (16 MiB), v6e (32 MiB) and v7x
# (32 MiB scoped of 64 MiB physical).  On v6e this can be raised to 4096-8192.
TB_DEFAULT = 2048


# ----------------------------- Pallas kernel -----------------------------
def head_kernel(cls_ref, w1_ref, consts_ref, out_ref):
    # cls_ref   : (TB, 1024) bf16  -- CLS token embeddings (batch tile)
    # w1_ref    : (1024, 8)  bf16  -- fc1 weight, (in, out), resident
    # consts_ref: (3, 8)     f32   -- row0 = b1, row1 = w2 row, row2 = [b2, 0..]
    # out_ref   : (TB, 1)    f32
    x = cls_ref[...]
    w1 = w1_ref[...]
    # fc1 on the MXU, f32 accumulation.
    h = jnp.dot(x, w1, preferred_element_type=jnp.float32)          # (TB, 8) f32
    b1 = consts_ref[0:1, :]                                         # (1, 8)
    w2 = consts_ref[1:2, :]                                         # (1, 8)
    b2 = consts_ref[2:3, 0:1]                                       # (1, 1)
    h = jnp.maximum(h + b1, 0.0)                                    # bias + ReLU (VPU)
    # fc2 as an 8-lane multiply + cross-lane reduce (VPU/XLU) -> no 2nd MXU op.
    y = jnp.sum(h * w2, axis=-1, keepdims=True) + b2                # (TB, 1)
    out_ref[...] = y.astype(out_ref.dtype)


def classifier_head(cls_emb, w1_t, head_consts, *, tb=TB_DEFAULT):
    """cls_emb: (B, 1024) bf16, w1_t: (1024, 8) bf16, head_consts: (3, 8) f32."""
    B = cls_emb.shape[0]
    tb = min(tb, B)                     # small B -> single full-extent block
    grid = (pl.cdiv(B, tb),)            # ragged last tile handled by Pallas masking
    return pl.pallas_call(
        head_kernel,
        out_shape=jax.ShapeDtypeStruct((B, H_OUT), jnp.float32),
        grid=grid,
        in_specs=[
            pl.BlockSpec((tb, H_BERT), lambda i: (i, 0)),      # batch-tiled activations
            pl.BlockSpec((H_BERT, H_FC1), lambda i: (0, 0)),   # resident fc1 weight
            pl.BlockSpec((3, H_FC1), lambda i: (0, 0)),        # resident packed consts
        ],
        out_specs=pl.BlockSpec((tb, H_OUT), lambda i: (i, 0)),
        compiler_params=pltpu.CompilerParams(
            dimension_semantics=("parallel",)),                # megacore on v7x
    )(cls_emb, w1_t, head_consts)


# --------------------------- "BERT" stub (glue) ---------------------------
def bert_stub(params, input_ids, attention_mask):
    # TODO(synk): the pretrained BERT encoder is not translated; this deterministic
    # elementwise embedding mixer stands in for it, producing (B, S, 1024).
    tok = params["tok_emb"][input_ids]                          # (B, S, 1024)
    pos = params["pos_emb"][None, : input_ids.shape[1], :]      # (1, S, 1024)
    return jnp.tanh(tok + pos) * attention_mask[..., None].astype(jnp.float32)


def bert_cls_stub(params, input_ids, attention_mask):
    # The stub is per-token elementwise, so the CLS hidden state depends only on
    # token 0: compute just that row (== bert_stub(...)[:, 0, :]) and emit bf16.
    # This avoids materializing a full (B, S, 1024) tensor and an extra CLS slice
    # in HBM, and halves the bytes the Pallas kernel reads.
    tok0 = params["tok_emb"][input_ids[:, 0]]                   # (B, 1024)
    pos0 = params["pos_emb"][0][None, :]                        # (1, 1024)
    h0 = jnp.tanh(tok0 + pos0) * attention_mask[:, 0:1].astype(jnp.float32)
    return h0.astype(jnp.bfloat16)                              # (B, 1024) bf16


def custom_classifier2_forward(params, input_ids, attention_mask, *, tb=TB_DEFAULT):
    cls = bert_cls_stub(params, input_ids, attention_mask)      # (B, 1024) bf16
    return classifier_head(cls, params["w1_t"], params["head_consts"], tb=tb)


# ------------------------------ param init -------------------------------
def init_params(key, vocab_size=100, max_seq=16):
    k = jax.random.split(key, 6)
    # PyTorch nn.Linear stores weight as (out, in).
    w1 = jax.random.normal(k[0], (H_FC1, H_BERT), jnp.float32) * 0.02
    b1 = jax.random.normal(k[1], (H_FC1,), jnp.float32) * 0.02
    w2 = jax.random.normal(k[2], (H_OUT, H_FC1), jnp.float32) * 0.02
    b2 = jax.random.normal(k[3], (H_OUT,), jnp.float32) * 0.02
    # Pack all tiny fc constants into one (3, 8) f32 block for a single resident DMA:
    # row 0 = b1, row 1 = w2 (as a lane row), row 2 = [b2, 0, ..., 0].
    head_consts = jnp.stack(
        [b1, w2[0], jnp.zeros((H_FC1,), jnp.float32).at[0].set(b2[0])], axis=0)
    return {
        "tok_emb": jax.random.normal(k[4], (vocab_size, H_BERT), jnp.float32) * 0.02,
        "pos_emb": jax.random.normal(k[5], (max_seq, H_BERT), jnp.float32) * 0.02,
        "w1_t": w1.T.astype(jnp.bfloat16),    # (1024, 8) bf16 for the MXU
        "head_consts": head_consts,           # (3, 8) f32
        # raw f32 copies kept for the pure-JAX reference check
        "b1": b1, "w2": w2, "b2": b2,
    }


def reference_head(cls_bf16, params):
    h = jnp.dot(cls_bf16, params["w1_t"], preferred_element_type=jnp.float32)
    h = jnp.maximum(h + params["b1"][None, :], 0.0)
    return h @ params["w2"].T + params["b2"][None, :]


if __name__ == "__main__":
    key = jax.random.PRNGKey(0)
    params = init_params(key)

    # ---- small-shape check (B=2, S=8), matches the module's interface ----
    B, S = 2, 8
    input_ids = jax.random.randint(jax.random.PRNGKey(1), (B, S), 0, 100, jnp.int32)
    attention_mask = jnp.ones((B, S), jnp.int32)

    out = jax.block_until_ready(
        custom_classifier2_forward(params, input_ids, attention_mask))

    # CLS-only stub must match slicing the full stub output.
    hidden_full = bert_stub(params, input_ids, attention_mask)       # (B, S, 1024) f32
    cls_full = hidden_full[:, 0, :].astype(jnp.bfloat16)
    cls_fast = bert_cls_stub(params, input_ids, attention_mask)
    assert jnp.allclose(cls_full.astype(jnp.float32),
                        cls_fast.astype(jnp.float32), atol=1e-5)

    ref = reference_head(cls_full, params)
    assert out.shape == (B, 1)
    assert jnp.allclose(out, ref, atol=5e-4), (out, ref)

    # ---- tiled-grid check: exercise batch tiling + ragged last tile ----
    B2 = 300
    ids2 = jax.random.randint(jax.random.PRNGKey(2), (B2, S), 0, 100, jnp.int32)
    mask2 = jnp.ones((B2, S), jnp.int32)
    out2 = jax.block_until_ready(
        custom_classifier2_forward(params, ids2, mask2, tb=128))     # grid=(3,), ragged
    ref2 = reference_head(bert_cls_stub(params, ids2, mask2), params)
    assert out2.shape == (B2, 1)
    assert jnp.allclose(out2, ref2, atol=5e-4), (out2, ref2)

    print("KERNEL_OK")
</pallas_src>

<mosaic_0001>
module attributes {stable_mosaic.version = 11 : i64} {
  func.func @head_kernel(%arg0: i32, %arg1: memref<2x1024xbf16, #tpu.memory_space<vmem>>, %arg2: memref<1024x8xbf16, #tpu.memory_space<vmem>>, %arg3: memref<3x8xf32, #tpu.memory_space<vmem>>, %arg4: memref<2x1xf32, #tpu.memory_space<vmem>>) attributes {dimension_semantics = [#tpu.dimension_semantics<parallel>], iteration_bounds = array<i64: 1>, scalar_prefetch = 0 : i64, scratch_operands = 0 : i64, tpu.core_type = #tpu.core_type<tc>, window_params = [{transform_indices = @transform_0, window_bounds = array<i64: 2, 1024>}, {pipeline_mode = #tpu.pipeline_mode<synchronous>, transform_indices = @transform_1, window_bounds = array<i64: 1024, 8>}, {pipeline_mode = #tpu.pipeline_mode<synchronous>, transform_indices = @transform_2, window_bounds = array<i64: 3, 8>}, {transform_indices = @transform_3, window_bounds = array<i64: 2, 1>}]} {
    %c0 = arith.constant 0 : index
    %c0_0 = arith.constant 0 : index
    %0 = vector.load %arg1[%c0, %c0_0] : memref<2x1024xbf16, #tpu.memory_space<vmem>>, vector<2x1024xbf16>
    %c0_1 = arith.constant 0 : index
    %c0_2 = arith.constant 0 : index
    %1 = vector.load %arg2[%c0_1, %c0_2] : memref<1024x8xbf16, #tpu.memory_space<vmem>>, vector<1024x8xbf16>
    %cst = arith.constant dense<0.000000e+00> : vector<2x8xf32>
    %2 = tpu.matmul %0, %1, %cst {dimension_numbers = #tpu.dot_dimension_numbers<[1], [0], [0], [1], [0, 0, 1, 1], [], []>} : vector<2x1024xbf16>, vector<1024x8xbf16>, vector<2x8xf32> -> vector<2x8xf32>
    %c0_3 = arith.constant 0 : index
    %c0_4 = arith.constant 0 : index
    %3 = vector.load %arg3[%c0_3, %c0_4] : memref<3x8xf32, #tpu.memory_space<vmem>>, vector<1x8xf32>
    %c1 = arith.constant 1 : index
    %c0_5 = arith.constant 0 : index
    %4 = vector.load %arg3[%c1, %c0_5] : memref<3x8xf32, #tpu.memory_space<vmem>>, vector<1x8xf32>
    %c2 = arith.constant 2 : index
    %c0_6 = arith.constant 0 : index
    %5 = vector.load %arg3[%c2, %c0_6] : memref<3x8xf32, #tpu.memory_space<vmem>>, vector<1x1xf32>
    %6 = vector.broadcast %3 : vector<1x8xf32> to vector<2x8xf32>
    %7 = arith.addf %2, %6 : vector<2x8xf32>
    %cst_7 = arith.constant 0.000000e+00 : f32
    %8 = vector.broadcast %cst_7 : f32 to vector<2x8xf32>
    %9 = arith.maximumf %7, %8 : vector<2x8xf32>
    %10 = vector.broadcast %4 : vector<1x8xf32> to vector<2x8xf32>
    %11 = arith.mulf %9, %10 : vector<2x8xf32>
    %cst_8 = arith.constant dense<0.000000e+00> : vector<2xf32>
    %12 = vector.multi_reduction <add>, %11, %cst_8 [1] : vector<2x8xf32> to vector<2xf32>
    %13 = vector.shape_cast %12 : vector<2xf32> to vector<2x1xf32>
    %14 = vector.broadcast %5 : vector<1x1xf32> to vector<2x1xf32>
    %15 = arith.addf %13, %14 : vector<2x1xf32>
    %c0_9 = arith.constant 0 : index
    %c0_10 = arith.constant 0 : index
    %16 = vector.load %arg4[%c0_9, %c0_10] : memref<2x1xf32, #tpu.memory_space<vmem>>, vector<2x1xf32>
    tpu.vector_store %arg4[%c0_9, %c0_10], %15 {strides = array<i32>} : memref<2x1xf32, #tpu.memory_space<vmem>>, vector<2x1xf32>,
    return
  }
  func.func @transform_0(%arg0: i32) -> (i32, i32) {
    %c0_i32 = arith.constant 0 : i32
    %c0_i32_0 = arith.constant 0 : i32
    return %arg0, %c0_i32 : i32, i32
  }
  func.func @transform_1(%arg0: i32) -> (i32, i32) {
    %c0_i32 = arith.constant 0 : i32
    %c0_i32_0 = arith.constant 0 : i32
    %c0_i32_1 = arith.constant 0 : i32
    return %c0_i32, %c0_i32_0 : i32, i32
  }
  func.func @transform_2(%arg0: i32) -> (i32, i32) {
    %c0_i32 = arith.constant 0 : i32
    %c0_i32_0 = arith.constant 0 : i32
    %c0_i32_1 = arith.constant 0 : i32
    return %c0_i32, %c0_i32_0 : i32, i32
  }
  func.func @transform_3(%arg0: i32) -> (i32, i32) {
    %c0_i32 = arith.constant 0 : i32
    %c0_i32_0 = arith.constant 0 : i32
    return %arg0, %c0_i32 : i32, i32
  }
}

</mosaic_0001>

<bundles_post_ra>
// kernel: tpu_custom_call.1
= control target key start
LH: loop header
LB: loop body
LE: loop exit
PB: predicated region body
PF: predicated region fallthrough
CT: control target
= control target key end

     0   :  { %v995_v22 = vmov 1966171168   ;;  %v156_v24 = vlaneseq  ;;  %vm759_vm0 = vcmask 58368   ;;  %vm768_vm1 = vcmask 1024   ;;  %s1236_s1 = inlined_call_operand.vmem [shape: bf16[1024,8], index: 1, kind: input, shape index: {}]   ;;  %s1237_s0 = inlined_call_operand.vmem [shape: bf16[2,1024], index: 0, kind: input, shape index: {}]   ;;  %s1238_s2 = inlined_call_operand.vmem [shape: f32[3,8], index: 2, kind: input, shape index: {}]   ;;  %s1239_s3 = inlined_call_operand.vmem [shape: f32[2,1], index: 3, kind: output, shape index: {}]  }
   0x1   :  { %v930_v0 = vld [vmem:[%s1236_s1 + $0x78] sm:$0xff]   ;;  %v934_v4 = vld [vmem:[%s1236_s1 + $0x70] sm:$0xff]   ;;  %v938_v8 = vld [vmem:[%s1236_s1 + $0x68] sm:$0xff]   ;;  %v154_v23 = vunpack.c.l.s4 %v995_v22 }
   0x2   :  { %v931_v1 = vld [vmem:[%s1236_s1 + $0xf8] sm:$0xff]   ;;  %841 = vmatprep.subr.bf16.mxu0 %v930_v0  ;;  %v935_v5 = vld [vmem:[%s1236_s1 + $0xf0] sm:$0xff]   ;;  %v939_v9 = vld [vmem:[%s1236_s1 + $0xe8] sm:$0xff]   ;;  %v157_v30 = vshrl.u32 %v156_v24, 7 }
   0x3   :  { %v932_v2 = vld [vmem:[%s1236_s1 + $0x38] sm:$0xff]   ;;  %863 = vmatprep.subr.bf16.mxu1 %v931_v1  ;;  %v936_v6 = vld [vmem:[%s1236_s1 + $0x30] sm:$0xff]   ;;  %v940_v10 = vld [vmem:[%s1236_s1 + $0x28] sm:$0xff]   ;;  %v155_v29 = vunpack.c.0.s8 %v154_v23 }
   0x4   :  { %v933_v3 = vld [vmem:[%s1236_s1 + $0xb8] sm:$0xff]   ;;  %842 = vmatpush3.bf16.msra.mxu0 %v932_v2  ;;  %v937_v7 = vld [vmem:[%s1236_s1 + $0xb0] sm:$0xff]   ;;  %v941_v11 = vld [vmem:[%s1236_s1 + $0xa8] sm:$0xff]  }
   0x5   :  { %864 = vmatpush3.bf16.msra.mxu1 %v933_v3  ;;  %843 = vmatprep.subr.bf16.mxu0 %v934_v4  ;;  %v942_v12 = vld [vmem:[%s1236_s1 + $0x60] sm:$0xff]   ;;  %v946_v16 = vld [vmem:[%s1236_s1 + $0x58] sm:$0xff]   ;;  %v950_v20 = vld [vmem:[%s1236_s1 + $0x50] sm:$0xff]   ;;  %v1106_v35 = vsub.s32 %v155_v29, %v157_v30 }
   0x6   :  { %865 = vmatprep.subr.bf16.mxu1 %v935_v5  ;;  %v943_v13 = vld [vmem:[%s1236_s1 + $0xe0] sm:$0xff]   ;;  %v947_v17 = vld [vmem:[%s1236_s1 + $0xd8] sm:$0xff]   ;;  %v951_v21 = vld [vmem:[%s1236_s1 + $0xd0] sm:$0xff]  }
   0x7   :  { %v944_v14 = vld [vmem:[%s1236_s1 + $0x20] sm:$0xff]   ;;  %v948_v18 = vld [vmem:[%s1236_s1 + $0x18] sm:$0xff]   ;;  %v952_v25 = vld [vmem:[%s1236_s1 + $0x10] sm:$0xff]  }
   0x8   :  { %844 = vmatpush3.bf16.msra.mxu0 %v936_v6  ;;  %v945_v15 = vld [vmem:[%s1236_s1 + $0xa0] sm:$0xff]   ;;  %v949_v19 = vld [vmem:[%s1236_s1 + $0x98] sm:$0xff]   ;;  %v953_v26 = vld [vmem:[%s1236_s1 + $0x90] sm:$0xff]  }
   0x9   :  { %866 = vmatpush3.bf16.msra.mxu1 %v937_v7  ;;  %845 = vmatprep.subr.bf16.mxu0 %v938_v8  ;;  %v954_v27 = vld [vmem:[%s1236_s1 + $0x48] sm:$0xff]   ;;  %v958_v33 = vld [vmem:[%s1236_s1 + $0x40] sm:$0xff]   ;;  %v963_v41 = vld [vmem:[%s1236_s1 + $0x178] sm:$0xff]  }
   0xa   :  { %867 = vmatprep.subr.bf16.mxu1 %v939_v9  ;;  %v955_v28 = vld [vmem:[%s1236_s1 + $0xc8] sm:$0xff]   ;;  %v959_v34 = vld [vmem:[%s1236_s1 + $0xc0] sm:$0xff]   ;;  %v964_v42 = vld [vmem:[%s1236_s1 + $0x1f8] sm:$0xff]  }
   0xb   :  { %v956_v31 = vld [vmem:[%s1236_s1 + $0x8] sm:$0xff]   ;;  %v960_v36 = vld [vmem:[%s1236_s1] sm:$0xff]   ;;  %v965_v47 = vld [vmem:[%s1236_s1 + $0x138] sm:$0xff]  }
   0xc   :  { %846 = vmatpush3.bf16.msra.mxu0 %v940_v10  ;;  %v957_v32 = vld [vmem:[%s1236_s1 + $0x88] sm:$0xff]   ;;  %v961_v37 = vld [vmem:[%s1236_s1 + $0x80] sm:$0xff]   ;;  %v967_v50 = vld [vmem:[%s1236_s1 + $0x170] sm:$0xff]  }
   0xd   :  { %868 = vmatpush3.bf16.msra.mxu1 %v941_v11  ;;  %847 = vmatprep.subr.bf16.mxu0 %v942_v12  ;;  %v15_v38 = vld [vmem:[%s1237_s0] sm:$0xff]  ;;  %v966_v52 = vld [vmem:[%s1236_s1 + $0x1b8] sm:$0xff]   ;;  %v968_v54 = vld [vmem:[%s1236_s1 + $0x1f0] sm:$0xff]  }
   0xe   :  { %869 = vmatprep.subr.bf16.mxu1 %v943_v13  ;;  %v152_v39 = vcombine.high %v15_v38, %v15_v38  ;;  %v159_v40 = vrot.slane %v15_v38, %v1106_v35  ;;  %v969_v55 = vld [vmem:[%s1236_s1 + $0x130] sm:$0xff]   ;;  %v971_v57 = vld [vmem:[%s1236_s1 + $0x168] sm:$0xff]   ;;  %v975_v61 = vld [vmem:[%s1236_s1 + $0x160] sm:$0xff]  }
   0xf   :  { %v970_v58 = vld [vmem:[%s1236_s1 + $0x1b0] sm:$0xff]   ;;  %v972_v59 = vld [vmem:[%s1236_s1 + $0x1e8] sm:$0xff]   ;;  %v976_v63 = vld [vmem:[%s1236_s1 + $0x1e0] sm:$0xff]  }
  0x10   :  { %848 = vmatpush3.bf16.msra.mxu0 %v944_v14  ;;  %v167_v43 = vcombine.high %v159_v40, %v159_v40  ;;  %v175_v44 = vrot.slane %v159_v40, %v1106_v35  ;;  %v1126_v45 = vrot.slane %v152_v39, %v1106_v35  ;;  %v973_v60 = vld [vmem:[%s1236_s1 + $0x128] sm:$0xff]   ;;  %v977_v0 = vld [vmem:[%s1236_s1 + $0x120] sm:$0xff]   ;;  %v979_v1 = vld [vmem:[%s1236_s1 + $0x158] sm:$0xff]  }
  0x11   :  { %870 = vmatpush3.bf16.msra.mxu1 %v945_v15  ;;  %849 = vmatprep.subr.bf16.mxu0 %v946_v16  ;;  %v974_v62 = vld [vmem:[%s1236_s1 + $0x1a8] sm:$0xff]   ;;  %v978_v2 = vld [vmem:[%s1236_s1 + $0x1a0] sm:$0xff]   ;;  %v980_v3 = vld [vmem:[%s1236_s1 + $0x1d8] sm:$0xff]  }
  0x12   :  { %871 = vmatprep.subr.bf16.mxu1 %v947_v17  ;;  %v189_v46 = vrot.slane %v167_v43, %v1106_v35  ;;  %v168_v48 = vcombine.high %v1126_v45, %v1126_v45  ;;  %v197_v49 = vcombine.high %v175_v44, %v175_v44  ;;  %v981_v4 = vld [vmem:[%s1236_s1 + $0x118] sm:$0xff]   ;;  %v983_v5 = vld [vmem:[%s1236_s1 + $0x150] sm:$0xff]   ;;  %v987_v9 = vld [vmem:[%s1236_s1 + $0x148] sm:$0xff]   ;;  %v182_v17 = vrot.slane %v1126_v45, %v1106_v35 }
  0x13   :  { %v982_v6 = vld [vmem:[%s1236_s1 + $0x198] sm:$0xff]   ;;  %v984_v7 = vld [vmem:[%s1236_s1 + $0x1d0] sm:$0xff]   ;;  %v988_v11 = vld [vmem:[%s1236_s1 + $0x1c8] sm:$0xff]  }
  0x14   :  { %850 = vmatpush3.bf16.msra.mxu0 %v948_v18  ;;  %625 = vmatprep.mubr.bf16.mxu0 %v189_v46  ;;  %v199_v51 = vcombine.high %v189_v46, %v189_v46  ;;  %v196_v53 = vrot.slane %v168_v48, %v1106_v35  ;;  %v985_v8 = vld [vmem:[%s1236_s1 + $0x110] sm:$0xff]   ;;  %v989_v12 = vld [vmem:[%s1236_s1 + $0x108] sm:$0xff]   ;;  %v991_v13 = vld [vmem:[%s1236_s1 + $0x140] sm:$0xff]  }
  0x15   :  { %872 = vmatpush3.bf16.msra.mxu1 %v949_v19  ;;  %851 = vmatprep.subr.bf16.mxu0 %v950_v20  ;;  %v986_v10 = vld [vmem:[%s1236_s1 + $0x190] sm:$0xff]   ;;  %v990_v14 = vld [vmem:[%s1236_s1 + $0x188] sm:$0xff]   ;;  %v992_v15 = vld [vmem:[%s1236_s1 + $0x1c0] sm:$0xff]   ;;  %v198_v19 = vcombine.high %v182_v17, %v182_v17 }
  0x16   :  { %873 = vmatprep.subr.bf16.mxu1 %v951_v21  ;;  %665 = vmatprep.mubr.bf16.mxu1 %v199_v51  ;;  %v200_v56 = vcombine.high %v196_v53, %v196_v53  ;;  %v993_v16 = vld [vmem:[%s1236_s1 + $0x100] sm:$0xff]  }
  0x17   :  { %v994_v18 = vld [vmem:[%s1236_s1 + $0x180] sm:$0xff]  }
  0x18   :  { %852 = vmatpush3.bf16.msra.mxu0 %v952_v25  ;;  %v774_v29 = vld [vmem:[%s1238_s2] ss:$0 sm:$0xff]  ;;  %v839_v45 = vld [vmem:[%s1238_s2 + $0x1] ss:$0 sm:$0xff] }
  0x19   :  { %874 = vmatpush3.bf16.msra.mxu1 %v953_v26  ;;  %853 = vmatprep.subr.bf16.mxu0 %v954_v27 }
  0x1a   :  { %875 = vmatprep.subr.bf16.mxu1 %v955_v28 }
  0x1c   :  { %854 = vmatpush3.bf16.msra.mxu0 %v956_v31 }
  0x1d   :  { %876 = vmatpush3.bf16.msra.mxu1 %v957_v32  ;;  %855 = vmatprep.subr.bf16.mxu0 %v958_v33 }
  0x1e   :  { %877 = vmatprep.subr.bf16.mxu1 %v959_v34 }
  0x20   :  { %856 = vmatpush3.bf16.msra.mxu0 %v960_v36 }
  0x21   :  { %878 = vmatpush3.bf16.msra.mxu1 %v961_v37  ;;  %885 = vmatprep.subr.bf16.mxu0 %v963_v41 }
  0x22   :  { %907 = vmatprep.subr.bf16.mxu1 %v964_v42 }
  0x23   :  { %626 = vmatmul.mubr.bf16.vlgmr.msra.gmra.mxu0 %v175_v44 }
  0x24   :  { %886 = vmatpush3.bf16.msra.mxu0 %v965_v47  ;;  %666 = vmatmul.mubr.bf16.vlgmr.msra.gmra.mxu1 %v197_v49  ;;  %v840_v49 = vld [vmem:[%s1238_s2 + $0x2] ss:$0 sm:$0xff] }
  0x25   :  { %887 = vmatprep.subr.bf16.mxu0 %v967_v50  ;;  %908 = vmatpush3.bf16.msra.mxu1 %v966_v52 }
  0x26   :  { %705 = vmatprep.mubr.bf16.mxu0 %v196_v53  ;;  %909 = vmatprep.subr.bf16.mxu1 %v968_v54 }
  0x27   :  { %745 = vmatprep.mubr.bf16.mxu1 %v200_v56 }
  0x28   :  { %888 = vmatpush3.bf16.msra.mxu0 %v969_v55 }
  0x29   :  { %889 = vmatprep.subr.bf16.mxu0 %v971_v57  ;;  %910 = vmatpush3.bf16.msra.mxu1 %v970_v58 }
  0x2a   :  { %911 = vmatprep.subr.bf16.mxu1 %v972_v59 }
  0x2c   :  { %890 = vmatpush3.bf16.msra.mxu0 %v973_v60 }
  0x2d   :  { %891 = vmatprep.subr.bf16.mxu0 %v975_v61  ;;  %912 = vmatpush3.bf16.msra.mxu1 %v974_v62 }
  0x2e   :  { %913 = vmatprep.subr.bf16.mxu1 %v976_v63 }
  0x30   :  { %892 = vmatpush3.bf16.msra.mxu0 %v977_v0 }
  0x31   :  { %893 = vmatprep.subr.bf16.mxu0 %v979_v1  ;;  %914 = vmatpush3.bf16.msra.mxu1 %v978_v2 }
  0x32   :  { %915 = vmatprep.subr.bf16.mxu1 %v980_v3 }
  0x34   :  { %894 = vmatpush3.bf16.msra.mxu0 %v981_v4 }
  0x35   :  { %895 = vmatprep.subr.bf16.mxu0 %v983_v5  ;;  %916 = vmatpush3.bf16.msra.mxu1 %v982_v6 }
  0x36   :  { %917 = vmatprep.subr.bf16.mxu1 %v984_v7 }
  0x38   :  { %896 = vmatpush3.bf16.msra.mxu0 %v985_v8 }
  0x39   :  { %897 = vmatprep.subr.bf16.mxu0 %v987_v9  ;;  %918 = vmatpush3.bf16.msra.mxu1 %v986_v10 }
  0x3a   :  { %919 = vmatprep.subr.bf16.mxu1 %v988_v11 }
  0x3c   :  { %898 = vmatpush3.bf16.msra.mxu0 %v989_v12 }
  0x3d   :  { %899 = vmatprep.subr.bf16.mxu0 %v991_v13  ;;  %920 = vmatpush3.bf16.msra.mxu1 %v990_v14 }
  0x3e   :  { %921 = vmatprep.subr.bf16.mxu1 %v992_v15 }
  0x40   :  { %900 = vmatpush3.bf16.msra.mxu0 %v993_v16 }
  0x41   :  { %922 = vmatpush3.bf16.msra.mxu1 %v994_v18 }
  0x43   :  { %706 = vmatmul.mubr.bf16.vlgmr.msra.gmra.mxu0 %v182_v17 }
  0x44   :  { %746 = vmatmul.mubr.bf16.vlgmr.msra.gmra.mxu1 %v198_v19 }
  0xe3   :  { %v857_v20 = vpop.f32.mrf.mxu0 }
  0xe4   :  { %v879_v21 = vpop.f32.mrf.mxu1 }
  0xe5   :  { %v858_v22 = vpop.f32.mrf.mxu0 }
  0xe6   :  { %v880_v23 = vpop.f32.mrf.mxu1  ;;  %v859_v28 = vadd.f32 %v858_v22, %v857_v20 }
  0xe7   :  { %v860_v24 = vpop.f32.mrf.mxu0  ;;  %v881_v31 = vadd.f32 %v880_v23, %v879_v21 }
  0xe8   :  { %v882_v25 = vpop.f32.mrf.mxu1  ;;  %v628_v30 = vadd.f32 %v859_v28, %v774_v29 }
  0xe9   :  { %v861_v26 = vpop.f32.mrf.mxu0 }
  0xea   :  { %v883_v27 = vpop.f32.mrf.mxu1  ;;  %v668_v35 = vadd.f32 %v881_v31, %v628_v30 }
 0x103   :  { %v901_v32 = vpop.f32.mrf.mxu0 }
 0x104   :  { %v923_v33 = vpop.f32.mrf.mxu1 }
 0x105   :  { %v902_v34 = vpop.f32.mrf.mxu0 }
 0x106   :  { %v903_v36 = vadd.f32 %v902_v34, %v901_v32  ;;  %v924_v37 = vpop.f32.mrf.mxu1 }
 0x107   :  { %v904_v38 = vpop.f32.mrf.mxu0  ;;  %v925_v40 = vadd.f32 %v924_v37, %v923_v33 }
 0x108   :  { %v708_v39 = vadd.f32 %v903_v36, %v668_v35  ;;  %v926_v41 = vpop.f32.mrf.mxu1 }
 0x109   :  { %v905_v42 = vpop.f32.mrf.mxu0 }
 0x10a   :  { %v748_v43 = vadd.f32 %v925_v40, %v708_v39  ;;  %v927_v44 = vpop.f32.mrf.mxu1 }
 0x10c   :  { %v753_v46 = vmax.f32 %v748_v43, 0.0 }
 0x10e   :  { %v758_v47 = vmul.f32 %v839_v45, %v753_v46 }
 0x110   :  { %v760_v48 = vsel %vm759_vm0, %v758_v47, 0.0 }
 0x111   :  { %761 = vadd.xlane.f32.xlu0 %v760_v48 }
 0x19a   :  { %v762_v50 = vpop.xlane.xlu0 %761 }
 0x19b   :  { %v767_v51 = vadd.f32 %v840_v49, %v762_v50 }
 0x19d   :  { %769 = vst.msk [vmem:[%s1239_s3] sm:$0x3] %vm768_vm1, %v767_v51 }

</bundles_post_ra>
